<compile_context>
chip_gen: v6e
topology: v6e:2x2x1
jax: 0.10.0
libtpu: 0.0.40
codegen_flags: <defaults>
</compile_context>

<pallas_src>
import functools

import jax
import jax.numpy as jnp
from jax.experimental import pallas as pl
from jax.experimental.pallas import tpu as pltpu

_SUBLANE = 8  # f32 sublane granularity; batch tiles are aligned to this.


def _round_up(x: int, m: int) -> int:
    return ((x + m - 1) // m) * m


# ---------------------------------------------------------------------------
# Kernel: one batch tile of  relu(x1 @ W1a + x2 @ W1b + b1) @ W2 + b2
# ---------------------------------------------------------------------------
def twin_mlp_kernel(x1_ref, x2_ref, w1a_ref, w1b_ref, b1_ref, w2_ref, b2_ref, o_ref):
    cdt = w1a_ref.dtype
    # layers[0]: CombineLinear -- the concat is fused away by splitting W1, so
    # the two halves of the contraction run as two MXU matmuls with f32 acc.
    h = jnp.dot(x1_ref[...].astype(cdt), w1a_ref[...],
                preferred_element_type=jnp.float32)
    h = h + jnp.dot(x2_ref[...].astype(cdt), w1b_ref[...],
                    preferred_element_type=jnp.float32)
    # bias + layers[1]: ReLU -- kept in f32 on the VPU (v5e has no bf16 VPU).
    h = jnp.maximum(h + b1_ref[...], 0.0)
    # layers[2]: Linear -- cast activations to the weight dtype (no-op for f32).
    o = jnp.dot(h.astype(w2_ref.dtype), w2_ref[...],
                preferred_element_type=jnp.float32)
    o_ref[...] = (o + b2_ref[...]).astype(o_ref.dtype)


# ---------------------------------------------------------------------------
# One-time parameter prep (hoisted out of the per-call forward path).
# Torch Linear layout (out_f, in_f) -> transposed; W1 split into its x1 / x2
# halves so the kernel never needs the concatenated activation slab.
# ---------------------------------------------------------------------------
def prepare_params(w1, b1, w2, b2, *, dtype=jnp.float32):
    H, twoD = w1.shape
    O, H2 = w2.shape
    D = twoD // 2
    assert H2 == H and 2 * D == twoD
    return dict(
        w1a=jnp.asarray(w1[:, :D].T, dtype),            # (D, H)
        w1b=jnp.asarray(w1[:, D:].T, dtype),            # (D, H)
        b1=jnp.asarray(b1, jnp.float32).reshape(1, H),   # biases stay f32
        w2=jnp.asarray(w2.T, dtype),                     # (H, O)
        b2=jnp.asarray(b2, jnp.float32).reshape(1, O),
    )


# ---------------------------------------------------------------------------
# Forward: batch-tiled grid, resident weights, no activation/output padding.
# ---------------------------------------------------------------------------
@functools.partial(jax.jit, static_argnames=("tb", "out_dtype"))
def _forward_impl(x1, x2, w1a, w1b, b1, w2, b2, *, tb, out_dtype):
    B, D = x1.shape
    H = w1a.shape[1]
    O = w2.shape[1]

    if B <= _SUBLANE:
        TB = B  # block equal to full dim is always legal
    else:
        tb_aligned = max(_SUBLANE, (tb // _SUBLANE) * _SUBLANE)
        # Cap so the grid has >= 2 iterations (v7x megacore split); no batch
        # padding -- the last block may be partial (OOB rows never written).
        half = _round_up(pl.cdiv(B, 2), _SUBLANE)
        TB = min(tb_aligned, half)
    grid = (pl.cdiv(B, TB),)

    return pl.pallas_call(
        twin_mlp_kernel,
        out_shape=jax.ShapeDtypeStruct((B, O), out_dtype),
        grid_spec=pltpu.PrefetchScalarGridSpec(
            num_scalar_prefetch=0,
            grid=grid,
            in_specs=[
                pl.BlockSpec((TB, D), lambda i: (i, 0)),   # x1: tiled on batch
                pl.BlockSpec((TB, D), lambda i: (i, 0)),   # x2: tiled on batch
                pl.BlockSpec((D, H), lambda i: (0, 0)),    # W1a: resident
                pl.BlockSpec((D, H), lambda i: (0, 0)),    # W1b: resident
                pl.BlockSpec((1, H), lambda i: (0, 0)),    # b1: resident
                pl.BlockSpec((H, O), lambda i: (0, 0)),    # W2: resident
                pl.BlockSpec((1, O), lambda i: (0, 0)),    # b2: resident
            ],
            out_specs=pl.BlockSpec((TB, O), lambda i: (i, 0)),
        ),
        compiler_params=pltpu.CompilerParams(
            dimension_semantics=("parallel",)),
    )(x1, x2, w1a, w1b, b1, w2, b2)


def two_input_sequential_forward(x1, x2, params, *, tb=512, out_dtype=jnp.float32):
    """x1, x2: (B, D).  params: output of prepare_params (prep done ONCE)."""
    return _forward_impl(x1, x2, params["w1a"], params["w1b"], params["b1"],
                         params["w2"], params["b2"], tb=tb, out_dtype=out_dtype)


def reference_forward(x1, x2, w1, b1, w2, b2):
    """Pure-JAX reference mirroring the PyTorch semantics exactly (f32)."""
    h = jnp.concatenate([x1, x2], axis=-1) @ w1.T + b1
    h = jnp.maximum(h, 0.0)
    return h @ w2.T + b2


if __name__ == "__main__":
    # Small shapes; B deliberately not a multiple of the chosen tile and O/H
    # not multiples of 128 so the partial-block and masked-store paths are hit.
    B, D, H, O = 200, 32, 64, 48

    key = jax.random.PRNGKey(0)
    k1, k2, k3, k4, k5, k6 = jax.random.split(key, 6)

    x1 = jax.random.normal(k1, (B, D), dtype=jnp.float32)
    x2 = jax.random.normal(k2, (B, D), dtype=jnp.float32)

    # Torch Linear layout: (out_features, in_features).
    w1 = jax.random.normal(k3, (H, 2 * D), dtype=jnp.float32) * 0.1
    b1 = jax.random.normal(k4, (H,), dtype=jnp.float32) * 0.1
    w2 = jax.random.normal(k5, (O, H), dtype=jnp.float32) * 0.1
    b2 = jax.random.normal(k6, (O,), dtype=jnp.float32) * 0.1

    ref = reference_forward(x1, x2, w1, b1, w2, b2)

    # f32 path: exact-ish check vs reference.
    params_f32 = prepare_params(w1, b1, w2, b2, dtype=jnp.float32)
    out_f32 = jax.block_until_ready(two_input_sequential_forward(x1, x2, params_f32))
    assert out_f32.shape == (B, O)
    assert jnp.allclose(out_f32, ref, atol=1e-4, rtol=1e-4), "f32 mismatch vs reference"

    # bf16 weights + bf16 output (v6e/v7x friendly), f32 accumulation inside.
    params_bf16 = prepare_params(w1, b1, w2, b2, dtype=jnp.bfloat16)
    out_bf16 = jax.block_until_ready(
        two_input_sequential_forward(x1, x2, params_bf16, out_dtype=jnp.bfloat16))
    assert out_bf16.shape == (B, O)
    assert jnp.allclose(out_bf16.astype(jnp.float32), ref, atol=7e-2, rtol=7e-2), \
        "bf16 mismatch vs reference"

    print("KERNEL_OK")
</pallas_src>

<mosaic_0001>
module attributes {stable_mosaic.version = 11 : i64} {
  func.func @twin_mlp_kernel(%arg0: i32, %arg1: memref<104x32xf32, #tpu.memory_space<vmem>>, %arg2: memref<104x32xf32, #tpu.memory_space<vmem>>, %arg3: memref<32x64xf32, #tpu.memory_space<vmem>>, %arg4: memref<32x64xf32, #tpu.memory_space<vmem>>, %arg5: memref<1x64xf32, #tpu.memory_space<vmem>>, %arg6: memref<64x48xf32, #tpu.memory_space<vmem>>, %arg7: memref<1x48xf32, #tpu.memory_space<vmem>>, %arg8: memref<104x48xf32, #tpu.memory_space<vmem>>) attributes {dimension_semantics = [#tpu.dimension_semantics<parallel>], iteration_bounds = array<i64: 2>, scalar_prefetch = 0 : i64, scratch_operands = 0 : i64, tpu.core_type = #tpu.core_type<tc>, window_params = [{transform_indices = @transform_0, window_bounds = array<i64: 104, 32>}, {transform_indices = @transform_1, window_bounds = array<i64: 104, 32>}, {pipeline_mode = #tpu.pipeline_mode<synchronous>, transform_indices = @transform_2, window_bounds = array<i64: 32, 64>}, {pipeline_mode = #tpu.pipeline_mode<synchronous>, transform_indices = @transform_3, window_bounds = array<i64: 32, 64>}, {pipeline_mode = #tpu.pipeline_mode<synchronous>, transform_indices = @transform_4, window_bounds = array<i64: 1, 64>}, {pipeline_mode = #tpu.pipeline_mode<synchronous>, transform_indices = @transform_5, window_bounds = array<i64: 64, 48>}, {pipeline_mode = #tpu.pipeline_mode<synchronous>, transform_indices = @transform_6, window_bounds = array<i64: 1, 48>}, {transform_indices = @transform_7, window_bounds = array<i64: 104, 48>}]} {
    %c0 = arith.constant 0 : index
    %c0_0 = arith.constant 0 : index
    %0 = vector.load %arg1[%c0, %c0_0] : memref<104x32xf32, #tpu.memory_space<vmem>>, vector<104x32xf32>
    %c0_1 = arith.constant 0 : index
    %c0_2 = arith.constant 0 : index
    %1 = vector.load %arg3[%c0_1, %c0_2] : memref<32x64xf32, #tpu.memory_space<vmem>>, vector<32x64xf32>
    %cst = arith.constant dense<0.000000e+00> : vector<104x64xf32>
    %2 = tpu.matmul %0, %1, %cst {dimension_numbers = #tpu.dot_dimension_numbers<[1], [0], [0], [1], [0, 0, 1, 1], [], []>} : vector<104x32xf32>, vector<32x64xf32>, vector<104x64xf32> -> vector<104x64xf32>
    %c0_3 = arith.constant 0 : index
    %c0_4 = arith.constant 0 : index
    %3 = vector.load %arg2[%c0_3, %c0_4] : memref<104x32xf32, #tpu.memory_space<vmem>>, vector<104x32xf32>
    %c0_5 = arith.constant 0 : index
    %c0_6 = arith.constant 0 : index
    %4 = vector.load %arg4[%c0_5, %c0_6] : memref<32x64xf32, #tpu.memory_space<vmem>>, vector<32x64xf32>
    %cst_7 = arith.constant dense<0.000000e+00> : vector<104x64xf32>
    %5 = tpu.matmul %3, %4, %cst_7 {dimension_numbers = #tpu.dot_dimension_numbers<[1], [0], [0], [1], [0, 0, 1, 1], [], []>} : vector<104x32xf32>, vector<32x64xf32>, vector<104x64xf32> -> vector<104x64xf32>
    %6 = arith.addf %2, %5 : vector<104x64xf32>
    %c0_8 = arith.constant 0 : index
    %c0_9 = arith.constant 0 : index
    %7 = vector.load %arg5[%c0_8, %c0_9] : memref<1x64xf32, #tpu.memory_space<vmem>>, vector<1x64xf32>
    %8 = vector.broadcast %7 : vector<1x64xf32> to vector<104x64xf32>
    %9 = arith.addf %6, %8 : vector<104x64xf32>
    %cst_10 = arith.constant 0.000000e+00 : f32
    %10 = vector.broadcast %cst_10 : f32 to vector<104x64xf32>
    %11 = arith.maximumf %9, %10 : vector<104x64xf32>
    %c0_11 = arith.constant 0 : index
    %c0_12 = arith.constant 0 : index
    %12 = vector.load %arg6[%c0_11, %c0_12] : memref<64x48xf32, #tpu.memory_space<vmem>>, vector<64x48xf32>
    %cst_13 = arith.constant dense<0.000000e+00> : vector<104x48xf32>
    %13 = tpu.matmul %11, %12, %cst_13 {dimension_numbers = #tpu.dot_dimension_numbers<[1], [0], [0], [1], [0, 0, 1, 1], [], []>} : vector<104x64xf32>, vector<64x48xf32>, vector<104x48xf32> -> vector<104x48xf32>
    %c0_14 = arith.constant 0 : index
    %c0_15 = arith.constant 0 : index
    %14 = vector.load %arg7[%c0_14, %c0_15] : memref<1x48xf32, #tpu.memory_space<vmem>>, vector<1x48xf32>
    %15 = vector.broadcast %14 : vector<1x48xf32> to vector<104x48xf32>
    %16 = arith.addf %13, %15 : vector<104x48xf32>
    %c0_16 = arith.constant 0 : index
    %c0_17 = arith.constant 0 : index
    %17 = vector.load %arg8[%c0_16, %c0_17] : memref<104x48xf32, #tpu.memory_space<vmem>>, vector<104x48xf32>
    tpu.vector_store %arg8[%c0_16, %c0_17], %16 {strides = array<i32>} : memref<104x48xf32, #tpu.memory_space<vmem>>, vector<104x48xf32>,
    return
  }
  func.func @transform_0(%arg0: i32) -> (i32, i32) {
    %c0_i32 = arith.constant 0 : i32
    %c0_i32_0 = arith.constant 0 : i32
    return %arg0, %c0_i32 : i32, i32
  }
  func.func @transform_1(%arg0: i32) -> (i32, i32) {
    %c0_i32 = arith.constant 0 : i32
    %c0_i32_0 = arith.constant 0 : i32
    return %arg0, %c0_i32 : i32, i32
  }
  func.func @transform_2(%arg0: i32) -> (i32, i32) {
    %c0_i32 = arith.constant 0 : i32
    %c0_i32_0 = arith.constant 0 : i32
    %c0_i32_1 = arith.constant 0 : i32
    return %c0_i32, %c0_i32_0 : i32, i32
  }
  func.func @transform_3(%arg0: i32) -> (i32, i32) {
    %c0_i32 = arith.constant 0 : i32
    %c0_i32_0 = arith.constant 0 : i32
    %c0_i32_1 = arith.constant 0 : i32
    return %c0_i32, %c0_i32_0 : i32, i32
  }
  func.func @transform_4(%arg0: i32) -> (i32, i32) {
    %c0_i32 = arith.constant 0 : i32
    %c0_i32_0 = arith.constant 0 : i32
    %c0_i32_1 = arith.constant 0 : i32
    return %c0_i32, %c0_i32_0 : i32, i32
  }
  func.func @transform_5(%arg0: i32) -> (i32, i32) {
    %c0_i32 = arith.constant 0 : i32
    %c0_i32_0 = arith.constant 0 : i32
    %c0_i32_1 = arith.constant 0 : i32
    return %c0_i32, %c0_i32_0 : i32, i32
  }
  func.func @transform_6(%arg0: i32) -> (i32, i32) {
    %c0_i32 = arith.constant 0 : i32
    %c0_i32_0 = arith.constant 0 : i32
    %c0_i32_1 = arith.constant 0 : i32
    return %c0_i32, %c0_i32_0 : i32, i32
  }
  func.func @transform_7(%arg0: i32) -> (i32, i32) {
    %c0_i32 = arith.constant 0 : i32
    %c0_i32_0 = arith.constant 0 : i32
    return %arg0, %c0_i32 : i32, i32
  }
}

</mosaic_0001>

<bundles_post_ra>
// kernel: _forward_impl.1
= control target key start
LH: loop header
LB: loop body
LE: loop exit
PB: predicated region body
PF: predicated region fallthrough
CT: control target
= control target key end

     0   :  { %s1723_s24 = smov 0   ;;  %s1725_s25 = smov 0   ;;  %s2142_s0 = inlined_call_operand.vmem [shape: f32[200,32], index: 0, kind: input, shape index: {}]   ;;  %s2143_s1 = inlined_call_operand.vmem [shape: f32[200,32], index: 1, kind: input, shape index: {}]   ;;  %s2144_s2 = inlined_call_operand.vmem [shape: f32[32,64], index: 2, kind: input, shape index: {}]   ;;  %s2145_s3 = inlined_call_operand.vmem [shape: f32[32,64], index: 3, kind: input, shape index: {}]   ;;  %s2146_s4 = inlined_call_operand.vmem [shape: f32[1,64], index: 4, kind: input, shape index: {}]   ;;  %s2147_s5 = inlined_call_operand.vmem [shape: f32[64,48], index: 5, kind: input, shape index: {}]   ;;  %s2148_s6 = inlined_call_operand.vmem [shape: f32[1,48], index: 6, kind: input, shape index: {}]   ;;  %s2149_s7 = inlined_call_operand.vmem [shape: f32[200,48], index: 7, kind: output, shape index: {}]  }
   0x1   :  { %s1727_s26 = smov 0  }
   0x2 LB: > { %s1736_s27 = sadd.s32 4294967295, %s1647_s26   ;;  %s1738_s28 = sadd.s32 1, %s1647_s26   ;;  %s1647_s26 = sphi %s1727_s26, %s2156_s26   ;;  %s1643_s25 = sphi %s1725_s25, %s2155_s25   ;;  %s1639_s24 = sphi %s1723_s24, %s2154_s24  }
   0x3   : > { %s178_s29 = ssub.s32 %s1647_s26, %s1738_s28  ;;  %s181_s30 = sadd.s32 1, %s1643_s25 }
   0x4   : > { %p179_p0 = scmp.eq.s32.totalorder %s178_s29, 0  ;;  %p191_p1 = scmp.ne.s32.totalorder %s1643_s25, %s1639_s24 }
   0x5   : > { %p192_p2 = scmp.eq.s32.totalorder %s1736_s27, 1  ;;  %p1228_p3 = scmp.ge.s32.totalorder %s1647_s26, 1 }
   0x6   : > { %s1746_s8 = scalar_select %p179_p0, %s1643_s25, %s181_s30  }
   0x7   : > { %p1748_p4 = por %p192_p2, %p191_p1  ;;  %p265_p5 = scmp.lt.s32.totalorder %s1647_s26, 3 }
   0x9   : > { %p266_p6 = pnand %p1228_p3, %p265_p5 }
   0xa   : > { %s1756_s12 = smul.u32 (!%p266_p6), 13, %s1736_s27  ;;  %s306_s21 = sand.u32 (!%p266_p6), 1, %s1639_s24  }
   0xb   : > { %269 = sbr.rel (%p266_p6) target bundleno = 545 (0x221), region = 48 }
   0xc   : > { %p314_p7 = scmp.lt.s32.totalorder (!%p266_p6), %s1756_s12, 24  ;;  %s1497_s22 = smul.u32 (!%p266_p6), 104, %s306_s21 }
   0xe   : > { %s2025_s29 = scalar_lea.vmem (!%p266_p6), [#allocation2], %s1497_s22  }
  0x10   : > { %v375_v0 = vld [vmem:[%s2145_s3 + $0x18] sm:$0xff]  ;;  %v1681_v1 = vmov 0.0   ;;  %v374_v2 = vld [vmem:[%s2145_s3 + $0x10] sm:$0xff]  ;;  %vm1682_vm0 = vmmov 0   ;;  %v373_v3 = vld [vmem:[%s2145_s3 + $0x8] sm:$0xff]  ;;  %s1771_s17 = scalar_select %p314_p7, %s1756_s12, 24 }
  0x11   : > { %1489 = vmatprep.subr.mxu1 %v1681_v1  ;;  %1369 = vmatprep.mubr.msk.f32.mxu1 %vm1682_vm0, %v1681_v1  ;;  %v372_v4 = vld [vmem:[%s2145_s3] sm:$0xff]  ;;  %vm376_vm1 = vcmask 261120   ;;  %v358_v5 = vld [vmem:[%s2144_s2 + $0x18] sm:$0xff]  ;;  %v357_v7 = vld [vmem:[%s2144_s2 + $0x10] sm:$0xff]  ;;  %vm763_vm2 = vcmask 523264   ;;  %vm933_vm3 = vcmask 392192  }
  0x12   : > { %1493 = vmatpush3.msra.mxu1 %v375_v0  ;;  %1340 = vmatprep.subr.mxu0 %v1681_v1  ;;  %s1229_s20 = sshll.u32 %s1771_s17, 3  ;;  %v356_v9 = vld [vmem:[%s2144_s2 + $0x8] sm:$0xff]  ;;  %v355_v11 = vld [vmem:[%s2144_s2] sm:$0xff]  ;;  %v755_v34 = vld [vmem:[%s2147_s5 + $0x38] sm:$0xff]  ;;  %s955_s24 = ssub.s32 (%p1748_p4), 25, %s1756_s12 }
  0x13   : > { %1490 = vmatprep.subr.mxu1 %v1681_v1  ;;  %1341 = vmatpush3.msra.mxu0 %v375_v0  ;;  %s1786_s23 = scalar_lea.vmem %s2143_s1, %s1229_s20  ;;  %s1847_s19 = scalar_lea.vmem %s2142_s0, %s1229_s20  ;;  %v754_v36 = vld [vmem:[%s2147_s5 + $0x30] sm:$0xff]  ;;  %v753_v37 = vld [vmem:[%s2147_s5 + $0x28] sm:$0xff]  ;;  %v752_v38 = vld [vmem:[%s2147_s5 + $0x20] sm:$0xff] }
  0x14   : > { %1494 = vmatpush3.msra.mxu1 %v374_v2  ;;  %1342 = vmatprep.subr.mxu0 %v1681_v1  ;;  %v366_v6 = vld [vmem:[%s1786_s23 + $0x38] sm:$0xff]  ;;  %v367_v8 = vld [vmem:[%s1786_s23 + $0x40] sm:$0xff]  ;;  %v368_v12 = vld [vmem:[%s1786_s23 + $0x48] sm:$0xff]  ;;  %s1284_s30 = smul.u32 (%p1748_p4), 104, %s1736_s27  ;;  %p956_p8 = scmp.lt.s32.totalorder (%p1748_p4), %s955_s24, 13 }
  0x15   : > { %1491 = vmatprep.subr.mxu1 %v1681_v1  ;;  %1343 = vmatpush3.msra.mxu0 %v374_v2  ;;  %v359_v10 = vld [vmem:[%s1786_s23] sm:$0xff]  ;;  %v360_v13 = vld [vmem:[%s1786_s23 + $0x8] sm:$0xff]  ;;  %v369_v14 = vld [vmem:[%s1786_s23 + $0x50] sm:$0xff] }
  0x16   : > { %1495 = vmatpush3.msra.mxu1 %v373_v3  ;;  %1344 = vmatprep.subr.mxu0 %v1681_v1  ;;  %v361_v15 = vld [vmem:[%s1786_s23 + $0x10] sm:$0xff]  ;;  %v370_v16 = vld [vmem:[%s1786_s23 + $0x58] sm:$0xff]  ;;  %v371_v18 = vld [vmem:[%s1786_s23 + $0x60] sm:$0xff]  ;;  %s2060_s13 = scalar_lea.vmem (%p1748_p4), %s2149_s7, %s1284_s30  }
  0x17   : > { %1492 = vmatprep.subr.mxu1 %v1681_v1  ;;  %1345 = vmatpush3.msra.mxu0 %v373_v3  ;;  %v362_v17 = vld [vmem:[%s1786_s23 + $0x18] sm:$0xff]  ;;  %v363_v19 = vld [vmem:[%s1786_s23 + $0x20] sm:$0xff]  ;;  %v364_v21 = vld [vmem:[%s1786_s23 + $0x28] sm:$0xff] }
  0x18   : > { %1496 = vmatpush3.msra.mxu1 %v372_v4  ;;  %1346 = vmatprep.subr.mxu0 %v1681_v1  ;;  %v342_v20 = vld [vmem:[%s1847_s19] sm:$0xff]  ;;  %v343_v22 = vld [vmem:[%s1847_s19 + $0x8] sm:$0xff]  ;;  %v365_v23 = vld [vmem:[%s1786_s23 + $0x30] sm:$0xff] }
  0x19   : > { %1370 = vmatmul.mubr.msk.f32.vlgmr.msra.gmra.mxu1 %vm376_vm1, %v366_v6  ;;  %1387 = vmatprep.subr.mxu1 %v1681_v1  ;;  %v344_v24 = vld [vmem:[%s1847_s19 + $0x10] sm:$0xff]  ;;  %v345_v25 = vld [vmem:[%s1847_s19 + $0x18] sm:$0xff]  ;;  %v346_v26 = vld [vmem:[%s1847_s19 + $0x20] sm:$0xff] }
  0x1a   : > { %1388 = vmatpush3.msra.mxu1 %v358_v5  ;;  %1372 = vmatprep.mubr.msk.f32.mxu1 %vm1682_vm0, %v1681_v1  ;;  %v347_v27 = vld [vmem:[%s1847_s19 + $0x28] sm:$0xff]  ;;  %v348_v28 = vld [vmem:[%s1847_s19 + $0x30] sm:$0xff]  ;;  %v349_v29 = vld [vmem:[%s1847_s19 + $0x38] sm:$0xff] }
  0x1b   : > { %1389 = vmatprep.subr.mxu1 %v1681_v1  ;;  %1347 = vmatpush3.msra.mxu0 %v372_v4  ;;  %v350_v30 = vld [vmem:[%s1847_s19 + $0x40] sm:$0xff]  ;;  %v351_v31 = vld [vmem:[%s1847_s19 + $0x48] sm:$0xff]  ;;  %v352_v32 = vld [vmem:[%s1847_s19 + $0x50] sm:$0xff] }
  0x1c   : > { %1390 = vmatpush3.msra.mxu1 %v357_v7  ;;  %1348 = vmatprep.mubr.msk.f32.mxu0 %vm1682_vm0, %v1681_v1  ;;  %v353_v33 = vld [vmem:[%s1847_s19 + $0x58] sm:$0xff]  ;;  %v354_v35 = vld [vmem:[%s1847_s19 + $0x60] sm:$0xff]  ;;  %v750_v40 = vld [vmem:[%s2147_s5 + $0x10] sm:$0xff] }
  0x1d   : > { %1373 = vmatmul.mubr.msk.f32.gmra.mxu1 %vm376_vm1, %v367_v8  ;;  %1391 = vmatprep.subr.mxu1 %v1681_v1  ;;  %v751_v39 = vld [vmem:[%s2147_s5 + $0x18] sm:$0xff]  ;;  %v749_v41 = vld [vmem:[%s2147_s5 + $0x8] sm:$0xff]  ;;  %v748_v42 = vld [vmem:[%s2147_s5] sm:$0xff] }
  0x1e   : > { %1375 = vmatprep.mubr.msk.f32.mxu1 %vm1682_vm0, %v1681_v1  ;;  %1392 = vmatpush3.msra.mxu1 %v356_v9  ;;  %v1963_v2 = vld [vmem:[%s2146_s4] ss:$0 sm:$0xff] }
  0x1f   : > { %1393 = vmatprep.subr.mxu1 %v1681_v1  ;;  %1349 = vmatmul.mubr.msk.f32.vlgmr.msra.gmra.mxu0 %vm376_vm1, %v359_v10 }
  0x20   : > { %1394 = vmatpush3.msra.mxu1 %v355_v11  ;;  %1351 = vmatprep.mubr.msk.f32.mxu0 %vm1682_vm0, %v1681_v1 }
  0x21   : > { %1376 = vmatmul.mubr.msk.f32.gmra.mxu1 %vm376_vm1, %v368_v12  ;;  %1434 = vmatprep.subr.mxu0 %v1681_v1 }
  0x22   : > { %1378 = vmatprep.mubr.msk.f32.mxu1 %vm1682_vm0, %v1681_v1  ;;  %1435 = vmatpush3.msra.mxu0 %v755_v34 }
  0x23   : > { %1352 = vmatmul.mubr.msk.f32.gmra.mxu0 %vm376_vm1, %v360_v13  ;;  %1436 = vmatprep.subr.mxu0 %v1681_v1 }
  0x24   : > { %1354 = vmatprep.mubr.msk.f32.mxu0 %vm1682_vm0, %v1681_v1  ;;  %1437 = vmatpush3.msra.mxu0 %v754_v36 }
  0x25   : > { %1379 = vmatmul.mubr.msk.f32.gmra.mxu1 %vm376_vm1, %v369_v14  ;;  %1438 = vmatprep.subr.mxu0 %v1681_v1 }
  0x26   : > { %1381 = vmatprep.mubr.msk.f32.mxu1 %vm1682_vm0, %v1681_v1  ;;  %1439 = vmatpush3.msra.mxu0 %v753_v37 }
  0x27   : > { %1355 = vmatmul.mubr.msk.f32.gmra.mxu0 %vm376_vm1, %v361_v15  ;;  %1440 = vmatprep.subr.mxu0 %v1681_v1 }
  0x28   : > { %1357 = vmatprep.mubr.msk.f32.mxu0 %vm1682_vm0, %v1681_v1  ;;  %1441 = vmatpush3.msra.mxu0 %v752_v38 }
  0x29   : > { %1382 = vmatmul.mubr.msk.f32.gmra.mxu1 %vm376_vm1, %v370_v16  ;;  %1442 = vmatprep.subr.mxu0 %v1681_v1 }
  0x2a   : > { %1384 = vmatprep.mubr.msk.f32.mxu1 %vm1682_vm0, %v1681_v1  ;;  %1443 = vmatpush3.msra.mxu0 %v751_v39 }
  0x2b   : > { %1358 = vmatmul.mubr.msk.f32.gmra.mxu0 %vm376_vm1, %v362_v17  ;;  %1444 = vmatprep.subr.mxu0 %v1681_v1 }
  0x2c   : > { %1360 = vmatprep.mubr.msk.f32.mxu0 %vm1682_vm0, %v1681_v1  ;;  %1445 = vmatpush3.msra.mxu0 %v750_v40 }
  0x2d   : > { %1385 = vmatmul.mubr.msk.f32.gmra.mxu1 %vm376_vm1, %v371_v18  ;;  %1446 = vmatprep.subr.mxu0 %v1681_v1 }
  0x2e   : > { %1395 = vmatprep.mubr.msk.f32.mxu1 %vm1682_vm0, %v1681_v1  ;;  %1447 = vmatpush3.msra.mxu0 %v749_v41 }
  0x2f   : > { %1361 = vmatmul.mubr.msk.f32.gmra.mxu0 %vm376_vm1, %v363_v19  ;;  %1448 = vmatprep.subr.mxu0 %v1681_v1 }
  0x30   : > { %1363 = vmatprep.mubr.msk.f32.mxu0 %vm1682_vm0, %v1681_v1  ;;  %1449 = vmatpush3.msra.mxu0 %v748_v42 }
  0x31   : > { %1396 = vmatmul.mubr.msk.f32.vlgmr.msra.gmra.mxu1 %vm376_vm1, %v342_v20 }
  0x32   : > { %1398 = vmatprep.mubr.msk.f32.mxu1 %vm1682_vm0, %v1681_v1 }
  0x33   : > { %1364 = vmatmul.mubr.msk.f32.gmra.mxu0 %vm376_vm1, %v364_v21 }
  0x34   : > { %1366 = vmatprep.mubr.msk.f32.mxu0 %vm1682_vm0, %v1681_v1 }
  0x35   : > { %1399 = vmatmul.mubr.msk.f32.gmra.mxu1 %vm376_vm1, %v343_v22 }
  0x36   : > { %1401 = vmatprep.mubr.msk.f32.mxu1 %vm1682_vm0, %v1681_v1 }
  0x37   : > { %1367 = vmatmul.mubr.msk.f32.gmra.mxu0 %vm376_vm1, %v365_v23 }
  0x38   : > { %1450 = vmatprep.mubr.msk.f32.mxu0 %vm1682_vm0, %v1681_v1 }
  0x39   : > { %1402 = vmatmul.mubr.msk.f32.gmra.mxu1 %vm376_vm1, %v344_v24 }
  0x3a   : > { %1404 = vmatprep.mubr.msk.f32.mxu1 %vm1682_vm0, %v1681_v1 }
  0x3d   : > { %1405 = vmatmul.mubr.msk.f32.gmra.mxu1 %vm376_vm1, %v345_v25 }
  0x3e   : > { %1407 = vmatprep.mubr.msk.f32.mxu1 %vm1682_vm0, %v1681_v1 }
  0x41   : > { %1408 = vmatmul.mubr.msk.f32.gmra.mxu1 %vm376_vm1, %v346_v26 }
  0x42   : > { %1410 = vmatprep.mubr.msk.f32.mxu1 %vm1682_vm0, %v1681_v1 }
  0x45   : > { %1411 = vmatmul.mubr.msk.f32.gmra.mxu1 %vm376_vm1, %v347_v27 }
  0x46   : > { %1413 = vmatprep.mubr.msk.f32.mxu1 %vm1682_vm0, %v1681_v1 }
  0x49   : > { %1414 = vmatmul.mubr.msk.f32.gmra.mxu1 %vm376_vm1, %v348_v28 }
  0x4a   : > { %1416 = vmatprep.mubr.msk.f32.mxu1 %vm1682_vm0, %v1681_v1 }
  0x4d   : > { %1417 = vmatmul.mubr.msk.f32.gmra.mxu1 %vm376_vm1, %v349_v29 }
  0x4e   : > { %1419 = vmatprep.mubr.msk.f32.mxu1 %vm1682_vm0, %v1681_v1 }
  0x51   : > { %1420 = vmatmul.mubr.msk.f32.gmra.mxu1 %vm376_vm1, %v350_v30 }
  0x52   : > { %1422 = vmatprep.mubr.msk.f32.mxu1 %vm1682_vm0, %v1681_v1 }
  0x55   : > { %1423 = vmatmul.mubr.msk.f32.gmra.mxu1 %vm376_vm1, %v351_v31 }
  0x56   : > { %1425 = vmatprep.mubr.msk.f32.mxu1 %vm1682_vm0, %v1681_v1 }
  0x59   : > { %1426 = vmatmul.mubr.msk.f32.gmra.mxu1 %vm376_vm1, %v352_v32 }
  0x5a   : > { %1428 = vmatprep.mubr.msk.f32.mxu1 %vm1682_vm0, %v1681_v1 }
  0x5d   : > { %1429 = vmatmul.mubr.msk.f32.gmra.mxu1 %vm376_vm1, %v353_v33 }
  0x5e   : > { %1431 = vmatprep.mubr.msk.f32.mxu1 %vm1682_vm0, %v1681_v1 }
  0x61   : > { %1432 = vmatmul.mubr.msk.f32.gmra.mxu1 %vm376_vm1, %v354_v35 }
  0xd9   : > { %v1948_v43 = vpop.f32.mrf.mxu1 }
  0xdb   : > { %v1371_v44 = vpop.f32.mrf.mxu1 }
  0xdd   : > { %v1950_v45 = vpop.f32.mrf.mxu1 }
  0xdf   : > { %v1374_v46 = vpop.f32.mrf.mxu1  ;;  %v482_v47 = vpop.f32.mrf.mxu0 }
  0xe1   : > { %v1952_v48 = vpop.f32.mrf.mxu1  ;;  %v1350_v49 = vpop.f32.mrf.mxu0 }
  0xe3   : > { %v1377_v50 = vpop.f32.mrf.mxu1  ;;  %v487_v51 = vpop.f32.mrf.mxu0 }
  0xe5   : > { %v1954_v52 = vpop.f32.mrf.mxu1  ;;  %v1353_v53 = vpop.f32.mrf.mxu0 }
  0xe7   : > { %v1380_v54 = vpop.f32.mrf.mxu1  ;;  %v492_v55 = vpop.f32.mrf.mxu0 }
  0xe9   : > { %v1956_v56 = vpop.f32.mrf.mxu1  ;;  %v1356_v57 = vpop.f32.mrf.mxu0 }
  0xeb   : > { %v1383_v58 = vpop.f32.mrf.mxu1  ;;  %v497_v59 = vpop.f32.mrf.mxu0 }
  0xed   : > { %v1958_v60 = vpop.f32.mrf.mxu1  ;;  %v1359_v61 = vpop.f32.mrf.mxu0 }
  0xef   : > { %v1386_v62 = vpop.f32.mrf.mxu1  ;;  %v502_v63 = vpop.f32.mrf.mxu0 }
  0xf1   : > { %v651_v0 = vpop.f32.mrf.mxu1  ;;  %v1362_v3 = vpop.f32.mrf.mxu0 }
  0xf2   : > { %v652_v4 = vadd.f32 %v651_v0, %v482_v47 }
  0xf3   : > { %v1397_v5 = vpop.f32.mrf.mxu1  ;;  %v507_v6 = vpop.f32.mrf.mxu0 }
  0xf4   : > { %v722_v7 = vadd.f32 %v1963_v2, %v652_v4 }
  0xf5   : > { %v656_v8 = vpop.f32.mrf.mxu1  ;;  %v1365_v9 = vpop.f32.mrf.mxu0 }
  0xf6   : > { %v735_v10 = vmax.f32 %v722_v7, 0.0  ;;  %v657_v11 = vadd.f32 %v656_v8, %v487_v51 }
  0xf7   : > { %v1400_v12 = vpop.f32.mrf.mxu1  ;;  %v512_v13 = vpop.f32.mrf.mxu0 }
  0xf8   : > { %v723_v14 = vadd.f32 %v1963_v2, %v657_v11  ;;  %1451 = vmatmul.mubr.msk.f32.vlgmr.msra.gmra.mxu0 %vm763_vm2, %v735_v10  ;;  %v1258_v11 = vld [vmem:[%s2148_s6] ss:$0 sm:$0xff] }
  0xf9   : > { %v661_v15 = vpop.f32.mrf.mxu1  ;;  %1453 = vmatprep.mubr.msk.f32.mxu0 %vm1682_vm0, %v1681_v1  ;;  %v1368_v16 = vpop.f32.mrf.mxu0 }
  0xfa   : > { %v736_v17 = vmax.f32 %v723_v14, 0.0  ;;  %v662_v18 = vadd.f32 %v661_v15, %v492_v55 }
  0xfb   : > { %v1403_v19 = vpop.f32.mrf.mxu1 }
  0xfc   : > { %v724_v20 = vadd.f32 %v1963_v2, %v662_v18  ;;  %1454 = vmatmul.mubr.msk.f32.gmra.mxu0 %vm763_vm2, %v736_v17 }
  0xfd   : > { %v666_v21 = vpop.f32.mrf.mxu1  ;;  %1456 = vmatprep.mubr.msk.f32.mxu0 %vm1682_vm0, %v1681_v1 }
  0xfe   : > { %v737_v22 = vmax.f32 %v724_v20, 0.0  ;;  %v667_v23 = vadd.f32 %v666_v21, %v497_v59 }
  0xff   : > { %v1406_v24 = vpop.f32.mrf.mxu1 }
 0x100   : > { %v725_v25 = vadd.f32 %v1963_v2, %v667_v23  ;;  %1457 = vmatmul.mubr.msk.f32.gmra.mxu0 %vm763_vm2, %v737_v22 }
 0x101   : > { %v671_v26 = vpop.f32.mrf.mxu1  ;;  %1459 = vmatprep.mubr.msk.f32.mxu0 %vm1682_vm0, %v1681_v1 }
 0x102   : > { %v738_v27 = vmax.f32 %v725_v25, 0.0  ;;  %v672_v28 = vadd.f32 %v671_v26, %v502_v63 }
 0x103   : > { %v1409_v29 = vpop.f32.mrf.mxu1 }
 0x104   : > { %v726_v30 = vadd.f32 %v1963_v2, %v672_v28  ;;  %1460 = vmatmul.mubr.msk.f32.gmra.mxu0 %vm763_vm2, %v738_v27 }
 0x105   : > { %v676_v31 = vpop.f32.mrf.mxu1  ;;  %1462 = vmatprep.mubr.msk.f32.mxu0 %vm1682_vm0, %v1681_v1 }
 0x106   : > { %v739_v32 = vmax.f32 %v726_v30, 0.0  ;;  %v677_v33 = vadd.f32 %v676_v31, %v507_v6 }
 0x107   : > { %v1412_v34 = vpop.f32.mrf.mxu1 }
 0x108   : > { %v727_v35 = vadd.f32 %v1963_v2, %v677_v33  ;;  %1463 = vmatmul.mubr.msk.f32.gmra.mxu0 %vm763_vm2, %v739_v32 }
 0x109   : > { %v681_v36 = vpop.f32.mrf.mxu1  ;;  %1465 = vmatprep.mubr.msk.f32.mxu0 %vm1682_vm0, %v1681_v1 }
 0x10a   : > { %v740_v37 = vmax.f32 %v727_v35, 0.0  ;;  %v682_v38 = vadd.f32 %v681_v36, %v512_v13 }
 0x10b   : > { %v1415_v39 = vpop.f32.mrf.mxu1 }
 0x10c   : > { %v728_v40 = vadd.f32 %v1963_v2, %v682_v38  ;;  %1466 = vmatmul.mubr.msk.f32.gmra.mxu0 %vm763_vm2, %v740_v37 }
 0x10d   : > { %v686_v41 = vpop.f32.mrf.mxu1  ;;  %1468 = vmatprep.mubr.msk.f32.mxu0 %vm1682_vm0, %v1681_v1 }
 0x10e   : > { %v741_v42 = vmax.f32 %v728_v40, 0.0  ;;  %v687_v44 = vadd.f32 %v686_v41, %v1948_v43 }
 0x10f   : > { %v1418_v46 = vpop.f32.mrf.mxu1 }
 0x110   : > { %v729_v47 = vadd.f32 %v1963_v2, %v687_v44  ;;  %1469 = vmatmul.mubr.msk.f32.gmra.mxu0 %vm763_vm2, %v741_v42 }
 0x111   : > { %v691_v49 = vpop.f32.mrf.mxu1  ;;  %1471 = vmatprep.mubr.msk.f32.mxu0 %vm1682_vm0, %v1681_v1 }
 0x112   : > { %v742_v50 = vmax.f32 %v729_v47, 0.0  ;;  %v692_v51 = vadd.f32 %v691_v49, %v1950_v45 }
 0x113   : > { %v1421_v53 = vpop.f32.mrf.mxu1 }
 0x114   : > { %v730_v54 = vadd.f32 %v1963_v2, %v692_v51  ;;  %1472 = vmatmul.mubr.msk.f32.gmra.mxu0 %vm763_vm2, %v742_v50 }
 0x115   : > { %v696_v55 = vpop.f32.mrf.mxu1  ;;  %1474 = vmatprep.mubr.msk.f32.mxu0 %vm1682_vm0, %v1681_v1 }
 0x116   : > { %v743_v43 = vmax.f32 %v730_v54, 0.0  ;;  %v697_v57 = vadd.f32 %v696_v55, %v1952_v48 }
 0x117   : > { %v1424_v58 = vpop.f32.mrf.mxu1 }
 0x118   : > { %v731_v59 = vadd.f32 %v1963_v2, %v697_v57  ;;  %1475 = vmatmul.mubr.msk.f32.gmra.mxu0 %vm763_vm2, %v743_v43 }
 0x119   : > { %v701_v61 = vpop.f32.mrf.mxu1  ;;  %1477 = vmatprep.mubr.msk.f32.mxu0 %vm1682_vm0, %v1681_v1 }
 0x11a   : > { %v744_v45 = vmax.f32 %v731_v59, 0.0  ;;  %v702_v62 = vadd.f32 %v701_v61, %v1954_v52 }
 0x11b   : > { %v1427_v63 = vpop.f32.mrf.mxu1 }
 0x11c   : > { %v732_v0 = vadd.f32 %v1963_v2, %v702_v62  ;;  %1478 = vmatmul.mubr.msk.f32.gmra.mxu0 %vm763_vm2, %v744_v45 }
 0x11d   : > { %v706_v3 = vpop.f32.mrf.mxu1  ;;  %1480 = vmatprep.mubr.msk.f32.mxu0 %vm1682_vm0, %v1681_v1 }
 0x11e   : > { %v745_v48 = vmax.f32 %v732_v0, 0.0  ;;  %v707_v4 = vadd.f32 %v706_v3, %v1956_v56 }
 0x11f   : > { %v1430_v5 = vpop.f32.mrf.mxu1 }
 0x120   : > { %v733_v6 = vadd.f32 %v1963_v2, %v707_v4  ;;  %1481 = vmatmul.mubr.msk.f32.gmra.mxu0 %vm763_vm2, %v745_v48 }
 0x121   : > { %v711_v7 = vpop.f32.mrf.mxu1  ;;  %1483 = vmatprep.mubr.msk.f32.mxu0 %vm1682_vm0, %v1681_v1 }
 0x122   : > { %v746_v52 = vmax.f32 %v733_v6, 0.0  ;;  %v712_v8 = vadd.f32 %v711_v7, %v1958_v60 }
 0x123   : > { %v1433_v9 = vpop.f32.mrf.mxu1 }
 0x124   : > { %v734_v10 = vadd.f32 %v1963_v2, %v712_v8  ;;  %1484 = vmatmul.mubr.msk.f32.gmra.mxu0 %vm763_vm2, %v746_v52 }
 0x125   : > { %1486 = vmatprep.mubr.msk.f32.mxu0 %vm1682_vm0, %v1681_v1 }
 0x126   : > { %v747_v56 = vmax.f32 %v734_v10, 0.0 }
 0x128   : > { %1487 = vmatmul.mubr.msk.f32.gmra.mxu0 %vm763_vm2, %v747_v56 }
 0x1b8   : > { %v869_v12 = vpop.f32.mrf.mxu0 }
 0x1b9   : > { %v870_v60 = vadd.f32 %v1258_v11, %v869_v12 }
 0x1ba   : > { %v1452_v13 = vpop.f32.mrf.mxu0 }
 0x1bb   : > { %934 = vst.msk [vmem:[%s2025_s29] sm:$0xff] %vm933_vm3, %v870_v60 }
 0x1bc   : > { %v874_v1 = vpop.f32.mrf.mxu0 }
 0x1bd   : > { %v875_v2 = vadd.f32 %v1258_v11, %v874_v1 }
 0x1be   : > { %v1455_v14 = vpop.f32.mrf.mxu0 }
 0x1bf   : > { %935 = vst.msk [vmem:[%s2025_s29 + $0x8] sm:$0xff] %vm933_vm3, %v875_v2 }
 0x1c0   : > { %v879_v15 = vpop.f32.mrf.mxu0 }
 0x1c1   : > { %v880_v16 = vadd.f32 %v1258_v11, %v879_v15 }
 0x1c2   : > { %v1458_v17 = vpop.f32.mrf.mxu0 }
 0x1c3   : > { %936 = vst.msk [vmem:[%s2025_s29 + $0x10] sm:$0xff] %vm933_vm3, %v880_v16 }
 0x1c4   : > { %v884_v18 = vpop.f32.mrf.mxu0 }
 0x1c5   : > { %v885_v19 = vadd.f32 %v1258_v11, %v884_v18 }
 0x1c6   : > { %v1461_v20 = vpop.f32.mrf.mxu0 }
 0x1c7   : > { %937 = vst.msk [vmem:[%s2025_s29 + $0x18] sm:$0xff] %vm933_vm3, %v885_v19 }
 0x1c8   : > { %v889_v21 = vpop.f32.mrf.mxu0 }
 0x1c9   : > { %v890_v22 = vadd.f32 %v1258_v11, %v889_v21 }
 0x1ca   : > { %v1464_v23 = vpop.f32.mrf.mxu0 }
 0x1cb   : > { %938 = vst.msk [vmem:[%s2025_s29 + $0x20] sm:$0xff] %vm933_vm3, %v890_v22 }
 0x1cc   : > { %v894_v24 = vpop.f32.mrf.mxu0 }
 0x1cd   : > { %v895_v25 = vadd.f32 %v1258_v11, %v894_v24 }
 0x1ce   : > { %v1467_v26 = vpop.f32.mrf.mxu0 }
 0x1cf   : > { %939 = vst.msk [vmem:[%s2025_s29 + $0x28] sm:$0xff] %vm933_vm3, %v895_v25 }
 0x1d0   : > { %v899_v27 = vpop.f32.mrf.mxu0 }
 0x1d1   : > { %v900_v28 = vadd.f32 %v1258_v11, %v899_v27 }
 0x1d2   : > { %v1470_v29 = vpop.f32.mrf.mxu0 }
 0x1d3   : > { %940 = vst.msk [vmem:[%s2025_s29 + $0x30] sm:$0xff] %vm933_vm3, %v900_v28 }
 0x1d4   : > { %v904_v30 = vpop.f32.mrf.mxu0 }
 0x1d5   : > { %v905_v31 = vadd.f32 %v1258_v11, %v904_v30 }
 0x1d6   : > { %v1473_v32 = vpop.f32.mrf.mxu0 }
 0x1d7   : > { %941 = vst.msk [vmem:[%s2025_s29 + $0x38] sm:$0xff] %vm933_vm3, %v905_v31 }
 0x1d8   : > { %v909_v33 = vpop.f32.mrf.mxu0 }
 0x1d9   : > { %v910_v34 = vadd.f32 %v1258_v11, %v909_v33 }
 0x1da   : > { %v1476_v35 = vpop.f32.mrf.mxu0 }
 0x1db   : > { %942 = vst.msk [vmem:[%s2025_s29 + $0x40] sm:$0xff] %vm933_vm3, %v910_v34 }
 0x1dc   : > { %v914_v36 = vpop.f32.mrf.mxu0 }
 0x1dd   : > { %v915_v37 = vadd.f32 %v1258_v11, %v914_v36 }
 0x1de   : > { %v1479_v38 = vpop.f32.mrf.mxu0 }
 0x1df   : > { %943 = vst.msk [vmem:[%s2025_s29 + $0x48] sm:$0xff] %vm933_vm3, %v915_v37 }
 0x1e0   : > { %v919_v39 = vpop.f32.mrf.mxu0 }
 0x1e1   : > { %v920_v40 = vadd.f32 %v1258_v11, %v919_v39 }
 0x1e2   : > { %v1482_v41 = vpop.f32.mrf.mxu0 }
 0x1e3   : > { %944 = vst.msk [vmem:[%s2025_s29 + $0x50] sm:$0xff] %vm933_vm3, %v920_v40 }
 0x1e4   : > { %v924_v42 = vpop.f32.mrf.mxu0 }
 0x1e5   : > { %v925_v44 = vadd.f32 %v1258_v11, %v924_v42 }
 0x1e6   : > { %v1485_v46 = vpop.f32.mrf.mxu0 }
 0x1e7   : > { %945 = vst.msk [vmem:[%s2025_s29 + $0x58] sm:$0xff] %vm933_vm3, %v925_v44  ;;  %953 = sbr.rel (!%p1748_p4) target bundleno = 545 (0x221), region = 52 }
 0x1e8   : > { %v929_v47 = vpop.f32.mrf.mxu0 }
 0x1e9   : > { %v930_v49 = vadd.f32 %v1258_v11, %v929_v47 }
 0x1ea   : > { %v1488_v50 = vpop.f32.mrf.mxu0 }
 0x1eb   : > { %946 = vst.msk [vmem:[%s2025_s29 + $0x60] sm:$0xff] %vm933_vm3, %v930_v49 }
 0x1ec   : > { %s2158_s24 = smov (!%p956_p8, %s955_s24), 13 }
 0x1ed   : > { %s1272_s14 = sshll.u32 %s2158_s24, 7 }
 0x1ee   : > { %p1275_p9 = scmp.eq.s32.totalorder %s1272_s14, 0 }
 0x1ef   : > { %1589 = sdivrem.u32 (!%p1275_p9), %s2158_s24, 13 }
 0x1f0   : > { %964 = sbr.rel (%p1275_p9) target bundleno = 545 (0x221), region = 56 }
 0x1f8   : > { %s2066_s9 = spop.drf %1589 }
 0x1f9   : > { %p1276_p10 = scmp.le.s32.totalorder %s2066_s9, 0 }
 0x1fa   : > { %s2151_s27 = smov (!%p1276_p10), %s2060_s13  ;;  %s2152_s12 = smov (!%p1276_p10), %s2025_s29 }
 0x1fb   : > { %1175 = sbr.rel (%p1276_p10) target bundleno = 520 (0x208), region = 135  ;;  %s2075_s15 = smov (!%p1276_p10), 0  }
 0x1fc   : > { %s2077_s16 = smov (!%p1276_p10), 0  }
 0x200 LB: >> { %v1053_v51 = vld [vmem:[%s1655_s12] sm:$0xff]  ;;  %v1055_v53 = vld [vmem:[%s1655_s12 + $0x8] sm:$0xff]  ;;  %v1057_v54 = vld [vmem:[%s1655_s12 + $0x10] sm:$0xff]  ;;  %s1079_s18 = sadd.s32 1, %s1659_s15  ;;  %s1047_s16 = sadd.s32 1, %s1663_s16   ;;  %s1663_s16 = sphi %s2077_s16, %s1047_s16   ;;  %s1659_s15 = sphi %s2075_s15, %s2153_s15   ;;  %s1655_s12 = sphi %s2152_s12, %s1084_s12   ;;  %s1651_s27 = sphi %s2151_s27, %s1085_s27  }
 0x201   : >> { %1054 = vst [vmem:[%s1651_s27] sm:$0xff] %v1053_v51  ;;  %1056 = vst [vmem:[%s1651_s27 + $0x8] sm:$0xff] %v1055_v53  ;;  %v1059_v55 = vld [vmem:[%s1655_s12 + $0x18] sm:$0xff]  ;;  %v1061_v43 = vld [vmem:[%s1655_s12 + $0x20] sm:$0xff]  ;;  %p1080_p11 = scmp.ge.s32.totalorder %s1079_s18, %s2066_s9  ;;  %p1046_p12 = scmp.ge.s32.totalorder %s1047_s16, %s2066_s9 }
 0x202   : >> { %1058 = vst [vmem:[%s1651_s27 + $0x10] sm:$0xff] %v1057_v54  ;;  %v1063_v57 = vld [vmem:[%s1655_s12 + $0x28] sm:$0xff]  ;;  %1060 = vst [vmem:[%s1651_s27 + $0x18] sm:$0xff] %v1059_v55  ;;  %v1065_v58 = vld [vmem:[%s1655_s12 + $0x30] sm:$0xff] }
 0x203   : >> { %1062 = vst [vmem:[%s1651_s27 + $0x20] sm:$0xff] %v1061_v43  ;;  %1064 = vst [vmem:[%s1651_s27 + $0x28] sm:$0xff] %v1063_v57  ;;  %v1067_v59 = vld [vmem:[%s1655_s12 + $0x38] sm:$0xff]  ;;  %v1069_v61 = vld [vmem:[%s1655_s12 + $0x40] sm:$0xff]  ;;  %s2160_s18 = smov (%p1080_p11, %s1079_s18), 0  ;;  %1049 = sbr.rel (!%p1046_p12) target bundleno = 512 (0x200), region = 141 }
 0x204   : >> { %1066 = vst [vmem:[%s1651_s27 + $0x30] sm:$0xff] %v1065_v58  ;;  %1068 = vst [vmem:[%s1651_s27 + $0x38] sm:$0xff] %v1067_v59  ;;  %v1071_v45 = vld [vmem:[%s1655_s12 + $0x48] sm:$0xff]  ;;  %v1073_v62 = vld [vmem:[%s1655_s12 + $0x50] sm:$0xff]  ;;  %s1082_s19 = smul.u32 104, %s2160_s18  ;;  %s2153_s15 = smov %s2160_s18 }
 0x205   : >> { %1070 = vst [vmem:[%s1651_s27 + $0x40] sm:$0xff] %v1069_v61  ;;  %v1075_v63 = vld [vmem:[%s1655_s12 + $0x58] sm:$0xff]  ;;  %1072 = vst [vmem:[%s1651_s27 + $0x48] sm:$0xff] %v1071_v45  ;;  %v1077_v0 = vld [vmem:[%s1655_s12 + $0x60] sm:$0xff] }
 0x206   : >> { %1074 = vst [vmem:[%s1651_s27 + $0x50] sm:$0xff] %v1073_v62  ;;  %1076 = vst [vmem:[%s1651_s27 + $0x58] sm:$0xff] %v1075_v63  ;;  %s1084_s12 = scalar_lea.vmem %s2025_s29, %s1082_s19 [#allocation2]  }
 0x207   : >> { %1078 = vst [vmem:[%s1651_s27 + $0x60] sm:$0xff] %v1077_v0  ;;  %s1085_s27 = scalar_lea.vmem %s2060_s13, %s1082_s19  }
 0x208 PF: > { %1591 = sdivrem.u32 %s2158_s24, 13 }
 0x209   : > { %s1277_s17 = smul.u32 104, %s2066_s9 }
 0x20b   : > { %s1090_s20 = scalar_lea.vmem %s2025_s29, %s1277_s17 [#allocation2]   ;;  %s1092_s21 = scalar_lea.vmem %s2060_s13, %s1277_s17  }
 0x211   : > { %s1592_s22 = spop.drf %1591 }
 0x212   : > { %p1279_p13 = scmp.le.s32.totalorder %s1592_s22, 0 }
 0x213   : > { %s1665_s23 = smov (!%p1279_p13), %s1092_s21   ;;  %s1669_s26 = smov (!%p1279_p13), %s1090_s20  }
 0x214   : > { %1189 = sbr.rel (%p1279_p13) target bundleno = 545 (0x221), region = 146  ;;  %s1673_s30 = smov (!%p1279_p13), 0  }
 0x215   : > { %s1677_s10 = smov (!%p1279_p13), 0  }
 0x219 LB: >> { %v1102_v3 = vld [vmem:[%s1671_s26] sm:$0xff]  ;;  %s1104_s11 = sadd.s32 1, %s1675_s30  ;;  %s1096_s10 = sadd.s32 1, %s1679_s10   ;;  %s1679_s10 = sphi %s1677_s10, %s1096_s10   ;;  %s1675_s30 = sphi %s1673_s30, %s1674_s30   ;;  %s1671_s26 = sphi %s1669_s26, %s1109_s26   ;;  %s1667_s23 = sphi %s1665_s23, %s1110_s23  }
 0x21a   : >> { %1103 = vst [vmem:[%s1667_s23] sm:$0xff] %v1102_v3  ;;  %p1105_p0 = scmp.ge.s32.totalorder %s1104_s11, %s1592_s22  ;;  %p1095_p1 = scmp.ge.s32.totalorder %s1096_s10, %s1592_s22 }
 0x21c   : >> { %s2162_s11 = smov (%p1105_p0, %s1104_s11), 0  ;;  %1098 = sbr.rel (!%p1095_p1) target bundleno = 537 (0x219), region = 152 }
 0x21d   : >> { %s1280_s29 = sshll.u32 %s2162_s11, 3  ;;  %s1674_s30 = smov %s2162_s11  }
 0x21e   : >> { %s1109_s26 = scalar_lea.vmem %s1090_s20, %s1280_s29 [#allocation2]   ;;  %s1110_s23 = scalar_lea.vmem %s1092_s21, %s1280_s29  }
 0x221 PF: > { %p14_p2 = scmp.ge.s32.totalorder %s1738_s28, 4   ;;  %s2154_s24 = smov %s1643_s25 }
 0x222   : > { %s2155_s25 = smov %s1746_s8  ;;  %s2156_s26 = smov %s1738_s28 }
 0x223   :  { %16 = sbr.rel (!%p14_p2) target bundleno = 2 (0x2), region = 163 }

</bundles_post_ra>
